<compile_context>
chip_gen: v6e
topology: v6e:2x2x1
jax: 0.10.0
libtpu: 0.0.40
codegen_flags: <defaults>
</compile_context>

<pallas_src>
import functools

import jax
import jax.numpy as jnp
from jax import lax
from jax.experimental import pallas as pl
from jax.experimental.pallas import tpu as pltpu


_VMEM_LIMIT_BYTES = 32 * 1024 * 1024
_LANE = 128
_SUBLANE = 8
_EPS = 1e-5


# ----------------------------- helpers -------------------------------------

def _round_up(v, m):
    return ((v + m - 1) // m) * m


def _pad2(a, rows, cols):
    r, c = a.shape
    if r == rows and c == cols:
        return a
    return jnp.pad(a, ((0, rows - r), (0, cols - c)))


def _pick_tile_n(n, f_in_pad, f_out_pad, x_itemsize, h_itemsize,
                 budget_bytes=8 * 1024 * 1024, cap=1024):
    """Largest 8-aligned node tile whose double-buffered x/h tiles fit budget."""
    per_row = 2 * (f_in_pad * x_itemsize + f_out_pad * max(h_itemsize, 4))
    t = budget_bytes // max(per_row, 1)
    t = min(t, cap, _round_up(max(n, 1), _SUBLANE))
    t = max(_SUBLANE, (t // _SUBLANE) * _SUBLANE)
    return int(t)


# ----------------------------- kernels --------------------------------------

def _linear_stats_kernel(n_true, tile_n, x_ref, w_ref, b_ref, h_ref, stats_ref):
    # x_ref: (tile_n, F_in_pad)   w_ref: (F_in_pad, F_out_pad)   b_ref: (1, F_out_pad)
    # h_ref: (tile_n, F_out_pad)  stats_ref: (1, 2, F_out_pad) per-tile [sum; sumsq]
    h = jnp.dot(x_ref[...], w_ref[...], preferred_element_type=jnp.float32)
    h = h + b_ref[...].astype(jnp.float32)
    h_ref[...] = h.astype(h_ref.dtype)

    # Mask rows that are N-padding so they do not pollute the BN statistics
    # (padded rows have x == 0 but h == bias, which is non-zero).
    row = pl.program_id(0) * tile_n + lax.broadcasted_iota(jnp.int32, h.shape, 0)
    hm = jnp.where(row < n_true, h, 0.0)
    psum = jnp.sum(hm, axis=0, keepdims=True)        # (1, F_out_pad)
    psq = jnp.sum(hm * hm, axis=0, keepdims=True)    # (1, F_out_pad)
    stats_ref[0] = jnp.concatenate([psum, psq], axis=0)


def _bn_finalize_kernel(n_true, eps, stats_ref, gamma_ref, beta_ref,
                        scale_ref, shift_ref):
    # stats_ref: (num_tiles, 2, F_out_pad) -> scale/shift: (1, F_out_pad)
    s = jnp.sum(stats_ref[...], axis=0)              # (2, F_out_pad)
    inv_n = 1.0 / float(n_true)
    mean = s[0:1, :] * inv_n
    var = jnp.maximum(s[1:2, :] * inv_n - mean * mean, 0.0)  # biased (training mode)
    inv_std = lax.rsqrt(var + eps)                   # EUP slot
    scale = gamma_ref[...].astype(jnp.float32) * inv_std
    scale_ref[...] = scale
    shift_ref[...] = beta_ref[...].astype(jnp.float32) - mean * scale


def _normalize_kernel(h_ref, scale_ref, shift_ref, o_ref):
    y = h_ref[...].astype(jnp.float32) * scale_ref[...] + shift_ref[...]
    o_ref[...] = y.astype(o_ref.dtype)


# ----------------------------- wrapper --------------------------------------

def feature_encoder_forward(x, params, *, eps=_EPS, tile_n=None, h_dtype=None):
    """FeatureEncoder.forward: Linear node encoder followed by BatchNorm1dNode."""
    n, f_in = x.shape
    w, b = params["w"], params["b"]
    gamma, beta = params["gamma"], params["beta"]
    f_out = w.shape[1]
    out_dtype = x.dtype
    # h_dtype=jnp.bfloat16 halves the HBM traffic of h on v6e/v7x.
    h_dtype = out_dtype if h_dtype is None else h_dtype

    f_in_pad = _round_up(f_in, _LANE)
    f_out_pad = _round_up(f_out, _LANE)
    if tile_n is None:
        tile_n = _pick_tile_n(n, f_in_pad, f_out_pad,
                              jnp.dtype(x.dtype).itemsize,
                              jnp.dtype(h_dtype).itemsize)
    n_pad = _round_up(max(n, 1), tile_n)
    num_tiles = n_pad // tile_n

    # Zero-padding is semantics-preserving: padded x columns meet padded
    # (zero) w rows, padded output columns/rows are sliced off at the end.
    x_p = _pad2(x, n_pad, f_in_pad)
    w_p = _pad2(w, f_in_pad, f_out_pad)
    b_p = _pad2(b.reshape(1, -1), 1, f_out_pad)
    g_p = _pad2(gamma.reshape(1, -1), 1, f_out_pad)
    be_p = _pad2(beta.reshape(1, -1), 1, f_out_pad)

    # K1: linear encoder + per-tile BN partial statistics (fused).
    h_p, stats = pl.pallas_call(
        functools.partial(_linear_stats_kernel, n, tile_n),
        out_shape=(
            jax.ShapeDtypeStruct((n_pad, f_out_pad), h_dtype),
            jax.ShapeDtypeStruct((num_tiles, 2, f_out_pad), jnp.float32),
        ),
        grid_spec=pltpu.PrefetchScalarGridSpec(
            num_scalar_prefetch=0,
            grid=(num_tiles,),
            in_specs=[
                pl.BlockSpec((tile_n, f_in_pad), lambda i: (i, 0)),
                pl.BlockSpec((f_in_pad, f_out_pad), lambda i: (0, 0)),  # resident
                pl.BlockSpec((1, f_out_pad), lambda i: (0, 0)),         # resident
            ],
            out_specs=[
                pl.BlockSpec((tile_n, f_out_pad), lambda i: (i, 0)),
                pl.BlockSpec((1, 2, f_out_pad), lambda i: (i, 0, 0)),
            ],
        ),
        compiler_params=pltpu.CompilerParams(
            dimension_semantics=("parallel",),
            vmem_limit_bytes=_VMEM_LIMIT_BYTES),
    )(x_p, w_p, b_p)

    # K2: reduce per-tile partials -> per-feature scale / shift (tiny).
    scale, shift = pl.pallas_call(
        functools.partial(_bn_finalize_kernel, n, eps),
        out_shape=(
            jax.ShapeDtypeStruct((1, f_out_pad), jnp.float32),
            jax.ShapeDtypeStruct((1, f_out_pad), jnp.float32),
        ),
        grid=(),
        in_specs=[
            pl.BlockSpec((num_tiles, 2, f_out_pad), lambda: (0, 0, 0)),
            pl.BlockSpec((1, f_out_pad), lambda: (0, 0)),
            pl.BlockSpec((1, f_out_pad), lambda: (0, 0)),
        ],
        out_specs=[
            pl.BlockSpec((1, f_out_pad), lambda: (0, 0)),
            pl.BlockSpec((1, f_out_pad), lambda: (0, 0)),
        ],
        compiler_params=pltpu.CompilerParams(
            vmem_limit_bytes=_VMEM_LIMIT_BYTES),
    )(stats, g_p, be_p)

    # K3: tiled, lane-dense normalize  y = h * scale + shift.
    y_p = pl.pallas_call(
        _normalize_kernel,
        out_shape=jax.ShapeDtypeStruct((n_pad, f_out_pad), out_dtype),
        grid_spec=pltpu.PrefetchScalarGridSpec(
            num_scalar_prefetch=0,
            grid=(num_tiles,),
            in_specs=[
                pl.BlockSpec((tile_n, f_out_pad), lambda i: (i, 0)),
                pl.BlockSpec((1, f_out_pad), lambda i: (0, 0)),         # resident
                pl.BlockSpec((1, f_out_pad), lambda i: (0, 0)),         # resident
            ],
            out_specs=pl.BlockSpec((tile_n, f_out_pad), lambda i: (i, 0)),
        ),
        compiler_params=pltpu.CompilerParams(
            dimension_semantics=("parallel",),
            vmem_limit_bytes=_VMEM_LIMIT_BYTES),
    )(h_p, scale, shift)

    return y_p[:n, :f_out]


# ----------------------------- params / reference ---------------------------

def init_params(key, dim_in, dim_inner, dtype=jnp.float32):
    kw, kb = jax.random.split(key)
    # Linear encoder: PyTorch stores W as [out, in]; we keep [in, out].
    bound = 1.0 / (dim_in ** 0.5)
    w = jax.random.uniform(kw, (dim_in, dim_inner), dtype, -bound, bound)
    b = jax.random.uniform(kb, (1, dim_inner), dtype, -bound, bound)
    # BatchNorm1d affine params (PyTorch init: gamma=1, beta=0).
    gamma = jnp.ones((1, dim_inner), dtype)
    beta = jnp.zeros((1, dim_inner), dtype)
    return {"w": w, "b": b, "gamma": gamma, "beta": beta}


def feature_encoder_ref(x, params, eps=_EPS):
    h = x @ params["w"] + params["b"]
    mean = h.mean(0, keepdims=True)
    var = ((h - mean) ** 2).mean(0, keepdims=True)
    return (h - mean) / jnp.sqrt(var + eps) * params["gamma"] + params["beta"]


# ------------------------------- main ----------------------------------------

if __name__ == "__main__":
    key = jax.random.PRNGKey(0)
    k_x, k_p, k_x2, k_p2, k_g, k_b = jax.random.split(key, 6)

    # Case 1: homogeneous node set, aligned small shapes.
    num_nodes, dim_in, dim_inner = 64, 32, 32
    x = jax.random.normal(k_x, (num_nodes, dim_in), jnp.float32)
    params = init_params(k_p, dim_in, dim_inner)
    out = jax.block_until_ready(feature_encoder_forward(x, params))
    ref = feature_encoder_ref(x, params)
    assert out.shape == (num_nodes, dim_inner)
    assert jnp.allclose(out, ref, atol=1e-4, rtol=1e-4)

    # Case 2: non-aligned node count / feature dims -> exercises N-padding,
    # row masking of BN stats, 128-lane padding, and non-trivial gamma/beta.
    n2, f_in2, f_out2 = 70, 20, 48
    x2 = jax.random.normal(k_x2, (n2, f_in2), jnp.float32)
    params2 = init_params(k_p2, f_in2, f_out2)
    params2["gamma"] = jax.random.normal(k_g, (1, f_out2), jnp.float32)
    params2["beta"] = jax.random.normal(k_b, (1, f_out2), jnp.float32)
    out2 = jax.block_until_ready(feature_encoder_forward(x2, params2))
    ref2 = feature_encoder_ref(x2, params2)
    assert out2.shape == (n2, f_out2)
    assert jnp.allclose(out2, ref2, atol=1e-4, rtol=1e-4)

    # TODO(synk): the real module dispatches on cfg.dataset.node_encoder_name
    # (heterogeneous per-node-type encoders); a single Linear+BN path is
    # implemented here for the homogeneous case.
    print("KERNEL_OK")
</pallas_src>

<mosaic_0001>
module attributes {stable_mosaic.version = 11 : i64} {
  func.func @_linear_stats_kernel(%arg0: i32, %arg1: memref<64x128xf32, #tpu.memory_space<vmem>>, %arg2: memref<128x128xf32, #tpu.memory_space<vmem>>, %arg3: memref<1x128xf32, #tpu.memory_space<vmem>>, %arg4: memref<64x128xf32, #tpu.memory_space<vmem>>, %arg5: memref<1x2x128xf32, #tpu.memory_space<vmem>>) attributes {dimension_semantics = [#tpu.dimension_semantics<parallel>], iteration_bounds = array<i64: 1>, scalar_prefetch = 0 : i64, scratch_operands = 0 : i64, tpu.core_type = #tpu.core_type<tc>, window_params = [{transform_indices = @transform_0, window_bounds = array<i64: 64, 128>}, {pipeline_mode = #tpu.pipeline_mode<synchronous>, transform_indices = @transform_1, window_bounds = array<i64: 128, 128>}, {pipeline_mode = #tpu.pipeline_mode<synchronous>, transform_indices = @transform_2, window_bounds = array<i64: 1, 128>}, {transform_indices = @transform_3, window_bounds = array<i64: 64, 128>}, {transform_indices = @transform_4, window_bounds = array<i64: 1, 2, 128>}]} {
    %c0 = arith.constant 0 : index
    %c0_0 = arith.constant 0 : index
    %0 = vector.load %arg1[%c0, %c0_0] : memref<64x128xf32, #tpu.memory_space<vmem>>, vector<64x128xf32>
    %c0_1 = arith.constant 0 : index
    %c0_2 = arith.constant 0 : index
    %1 = vector.load %arg2[%c0_1, %c0_2] : memref<128x128xf32, #tpu.memory_space<vmem>>, vector<128x128xf32>
    %cst = arith.constant dense<0.000000e+00> : vector<64x128xf32>
    %2 = tpu.matmul %0, %1, %cst {dimension_numbers = #tpu.dot_dimension_numbers<[1], [0], [0], [1], [0, 0, 1, 1], [], []>} : vector<64x128xf32>, vector<128x128xf32>, vector<64x128xf32> -> vector<64x128xf32>
    %c0_3 = arith.constant 0 : index
    %c0_4 = arith.constant 0 : index
    %3 = vector.load %arg3[%c0_3, %c0_4] : memref<1x128xf32, #tpu.memory_space<vmem>>, vector<1x128xf32>
    %4 = vector.broadcast %3 : vector<1x128xf32> to vector<64x128xf32>
    %5 = arith.addf %2, %4 : vector<64x128xf32>
    %c0_5 = arith.constant 0 : index
    %c0_6 = arith.constant 0 : index
    %6 = vector.load %arg4[%c0_5, %c0_6] : memref<64x128xf32, #tpu.memory_space<vmem>>, vector<64x128xf32>
    tpu.vector_store %arg4[%c0_5, %c0_6], %5 {strides = array<i32>} : memref<64x128xf32, #tpu.memory_space<vmem>>, vector<64x128xf32>,
    %c64_i32 = arith.constant 64 : i32
    %7 = arith.muli %arg0, %c64_i32 : i32
    %8 = tpu.iota {dimensions = array<i32: 0>} : vector<64x128xi32>
    %9 = vector.broadcast %7 : i32 to vector<64x128xi32>
    %10 = arith.addi %9, %8 : vector<64x128xi32>
    %c64_i32_7 = arith.constant 64 : i32
    %11 = vector.broadcast %c64_i32_7 : i32 to vector<64x128xi32>
    %12 = arith.cmpi slt, %10, %11 : vector<64x128xi32>
    %cst_8 = arith.constant 0.000000e+00 : f32
    %13 = vector.broadcast %cst_8 : f32 to vector<64x128xf32>
    %14 = arith.select %12, %5, %13 : vector<64x128xi1>, vector<64x128xf32>
    %cst_9 = arith.constant dense<0.000000e+00> : vector<128xf32>
    %15 = vector.multi_reduction <add>, %14, %cst_9 [0] : vector<64x128xf32> to vector<128xf32>
    %16 = vector.shape_cast %15 : vector<128xf32> to vector<1x128xf32>
    %17 = arith.mulf %14, %14 : vector<64x128xf32>
    %cst_10 = arith.constant dense<0.000000e+00> : vector<128xf32>
    %18 = vector.multi_reduction <add>, %17, %cst_10 [0] : vector<64x128xf32> to vector<128xf32>
    %19 = vector.shape_cast %18 : vector<128xf32> to vector<1x128xf32>
    %20 = tpu.concatenate %16, %19 in 0 : vector<1x128xf32>, vector<1x128xf32> -> vector<2x128xf32>
    %c0_11 = arith.constant 0 : index
    %c0_12 = arith.constant 0 : index
    %c0_13 = arith.constant 0 : index
    %21 = vector.load %arg5[%c0_11, %c0_12, %c0_13] : memref<1x2x128xf32, #tpu.memory_space<vmem>>, vector<1x2x128xf32>
    %22 = vector.shape_cast %21 : vector<1x2x128xf32> to vector<2x128xf32>
    %23 = vector.shape_cast %20 : vector<2x128xf32> to vector<1x2x128xf32>
    tpu.vector_store %arg5[%c0_11, %c0_12, %c0_13], %23 {strides = array<i32>} : memref<1x2x128xf32, #tpu.memory_space<vmem>>, vector<1x2x128xf32>,
    return
  }
  func.func @transform_0(%arg0: i32) -> (i32, i32) {
    %c0_i32 = arith.constant 0 : i32
    %c0_i32_0 = arith.constant 0 : i32
    return %arg0, %c0_i32 : i32, i32
  }
  func.func @transform_1(%arg0: i32) -> (i32, i32) {
    %c0_i32 = arith.constant 0 : i32
    %c0_i32_0 = arith.constant 0 : i32
    %c0_i32_1 = arith.constant 0 : i32
    return %c0_i32, %c0_i32_0 : i32, i32
  }
  func.func @transform_2(%arg0: i32) -> (i32, i32) {
    %c0_i32 = arith.constant 0 : i32
    %c0_i32_0 = arith.constant 0 : i32
    %c0_i32_1 = arith.constant 0 : i32
    return %c0_i32, %c0_i32_0 : i32, i32
  }
  func.func @transform_3(%arg0: i32) -> (i32, i32) {
    %c0_i32 = arith.constant 0 : i32
    %c0_i32_0 = arith.constant 0 : i32
    return %arg0, %c0_i32 : i32, i32
  }
  func.func @transform_4(%arg0: i32) -> (i32, i32, i32) {
    %c0_i32 = arith.constant 0 : i32
    %c0_i32_0 = arith.constant 0 : i32
    %c0_i32_1 = arith.constant 0 : i32
    return %arg0, %c0_i32, %c0_i32_0 : i32, i32, i32
  }
}

</mosaic_0001>

<bundles_post_ra>
// kernel: tpu_custom_call.1
= control target key start
LH: loop header
LB: loop body
LE: loop exit
PB: predicated region body
PF: predicated region fallthrough
CT: control target
= control target key end

     0   :  { %10 = vsyncpa [#allocation3], 0  ;;  %s544_s0 = inlined_call_operand.hbm [shape: f32[64,128], index: 0, kind: input, shape index: {}]   ;;  %s545_s1 = inlined_call_operand.hbm [shape: f32[128,128], index: 1, kind: input, shape index: {}]   ;;  %s546_s2 = inlined_call_operand.vmem [shape: f32[1,128], index: 2, kind: input, shape index: {}]   ;;  %s547_s3 = inlined_call_operand.hbm [shape: f32[64,128], index: 3, kind: output, shape index: {0}]   ;;  %s548_s4 = inlined_call_operand.hbm [shape: f32[1,2,128], index: 4, kind: output, shape index: {1}]  }
   0x1   :  { %11 = vsyncpa [#allocation6], 0 }
   0x2   :  { %12 = vsyncpa [#allocation4], 0 }
   0x3   :  { %13 = vsyncpa [#allocation9], 0  ;;  %s489_s15 = smov [#allocation2]  }
   0x4   :  { %s19_s16 = sshll.u32 %s489_s15, 4  ;;  %s20_s16 = int_to_ptr.vmem [resolvable:$true] %s19_s16 }
   0x5   :  { %s409_s17 = scalar_lea.vmem %s20_s16, 1024  ;;  %p414_p1 = scmp.lt.s32.totalorder %s20_s16, %s20_s16 }
   0x6   :  { %p410_p0 = scmp.ne.s32.totalorder %s20_s16, %s409_s17  ;;  %p415_p2 = scmp.lt.s32.totalorder %s409_s17, %s409_s17 }
   0x8   :  { %p416_p3 = por %p415_p2, %p414_p1 }
   0xa   :  { %p417_p4 = pnand %p416_p3, %p410_p0 }
   0xc   :  { %420 = shalt.err (!%p417_p4)
}
   0xd   :  { %s490_s18 = smov 128   ;;  %s491_s19 = smov 8  }
   0xe   :  { %25 = dma.hbm_to_vmem [thread:$0]  %s544_s0, 1024, %s20_s16, [#allocation3], %s490_s18, %s490_s18, %s491_s19  }
   0xf   :  { %s492_s22 = smov [#allocation5]  }
  0x10   :  { %s31_s23 = sshll.u32 %s492_s22, 4  ;;  %s32_s23 = int_to_ptr.vmem [resolvable:$true] %s31_s23 }
  0x11   :  { %s429_s24 = scalar_lea.vmem %s32_s23, 2048  ;;  %p434_p6 = scmp.lt.s32.totalorder %s32_s23, %s32_s23 }
  0x12   :  { %p430_p5 = scmp.ne.s32.totalorder %s32_s23, %s429_s24  ;;  %p435_p7 = scmp.lt.s32.totalorder %s429_s24, %s429_s24 }
  0x14   :  { %p436_p8 = por %p435_p7, %p434_p6 }
  0x16   :  { %p437_p9 = pnand %p436_p8, %p430_p5 }
  0x18   :  { %440 = shalt.err (!%p437_p9)
}
  0x19   :  { %37 = dma.hbm_to_vmem [thread:$0]  %s545_s1, 2048, %s32_s23, [#allocation6], %s490_s18, %s490_s18, %s491_s19  }
  0x1a   :  { %481 = dma.done.wait [#allocation3], 1024  }
  0x1b   :  { %482 = vsyncadd [#allocation3], 4294966272 }
  0x1c   :  { %483 = dma.done.wait [#allocation6], 2048  }
  0x1d   :  { %484 = vsyncadd [#allocation6], 4294965248  ;;  %v69_v0 = vld [vmem:[#allocation5 + $0x78] sm:$0xff]  ;;  %v68_v1 = vld [vmem:[#allocation5 + $0x70] sm:$0xff]  ;;  %s493_s27 = smov [#allocation7]  }
  0x1e   :  { %319 = vmatprep.subr.mxu0 %v69_v0  ;;  %363 = vmatprep.subr.mxu1 %v69_v0  ;;  %v67_v2 = vld [vmem:[#allocation5 + $0x68] sm:$0xff]  ;;  %v66_v3 = vld [vmem:[#allocation5 + $0x60] sm:$0xff]  ;;  %v65_v4 = vld [vmem:[#allocation5 + $0x58] sm:$0xff]  ;;  %s267_s28 = sshll.u32 %s493_s27, 4  ;;  %s268_s28 = int_to_ptr.vmem [resolvable:$true] %s267_s28 }
  0x1f   :  { %320 = vmatpush3.msra.mxu0 %v69_v0  ;;  %379 = vmatpush3.msra.mxu1 %v69_v0  ;;  %v64_v5 = vld [vmem:[#allocation5 + $0x50] sm:$0xff]  ;;  %v63_v6 = vld [vmem:[#allocation5 + $0x48] sm:$0xff]  ;;  %v62_v7 = vld [vmem:[#allocation5 + $0x40] sm:$0xff]  ;;  %p446_p11 = scmp.lt.s32.totalorder %s268_s28, %s268_s28 }
  0x20   :  { %321 = vmatprep.subr.mxu0 %v68_v1  ;;  %364 = vmatprep.subr.mxu1 %v68_v1  ;;  %v61_v8 = vld [vmem:[#allocation5 + $0x38] sm:$0xff]  ;;  %v60_v9 = vld [vmem:[#allocation5 + $0x30] sm:$0xff]  ;;  %v59_v10 = vld [vmem:[#allocation5 + $0x28] sm:$0xff] }
  0x21   :  { %322 = vmatpush3.msra.mxu0 %v68_v1  ;;  %380 = vmatpush3.msra.mxu1 %v68_v1  ;;  %v58_v11 = vld [vmem:[#allocation5 + $0x20] sm:$0xff]  ;;  %v57_v12 = vld [vmem:[#allocation5 + $0x18] sm:$0xff]  ;;  %v56_v13 = vld [vmem:[#allocation5 + $0x10] sm:$0xff] }
  0x22   :  { %323 = vmatprep.subr.mxu0 %v67_v2  ;;  %365 = vmatprep.subr.mxu1 %v67_v2  ;;  %v46_v14 = vld [vmem:[#allocation2] sm:$0xff]  ;;  %v55_v15 = vld [vmem:[#allocation5 + $0x8] sm:$0xff]  ;;  %v48_v18 = vld [vmem:[#allocation2 + $0x10] sm:$0xff] }
  0x23   :  { %324 = vmatpush3.msra.mxu0 %v67_v2  ;;  %381 = vmatpush3.msra.mxu1 %v67_v2  ;;  %v54_v16 = vld [vmem:[#allocation5] sm:$0xff]  ;;  %v47_v17 = vld [vmem:[#allocation2 + $0x8] sm:$0xff]  ;;  %v52_v21 = vld [vmem:[#allocation2 + $0x30] sm:$0xff] }
  0x24   :  { %325 = vmatprep.subr.mxu0 %v66_v3  ;;  %366 = vmatprep.subr.mxu1 %v66_v3  ;;  %v50_v19 = vld [vmem:[#allocation2 + $0x20] sm:$0xff]  ;;  %v51_v20 = vld [vmem:[#allocation2 + $0x28] sm:$0xff]  ;;  %v49_v22 = vld [vmem:[#allocation2 + $0x18] sm:$0xff] }
  0x25   :  { %326 = vmatpush3.msra.mxu0 %v66_v3  ;;  %382 = vmatpush3.msra.mxu1 %v66_v3  ;;  %v53_v23 = vld [vmem:[#allocation2 + $0x38] sm:$0xff]  ;;  %v294_v24 = vld [vmem:[%s546_s2] ss:$0 sm:$0xff]  ;;  %s441_s2 = scalar_lea.vmem %s268_s28, 1024 }
  0x26   :  { %327 = vmatprep.subr.mxu0 %v65_v4  ;;  %367 = vmatprep.subr.mxu1 %v65_v4  ;;  %p442_p10 = scmp.ne.s32.totalorder %s268_s28, %s441_s2  ;;  %p447_p12 = scmp.lt.s32.totalorder %s441_s2, %s441_s2 }
  0x27   :  { %328 = vmatpush3.msra.mxu0 %v65_v4  ;;  %383 = vmatpush3.msra.mxu1 %v65_v4 }
  0x28   :  { %329 = vmatprep.subr.mxu0 %v64_v5  ;;  %368 = vmatprep.subr.mxu1 %v64_v5  ;;  %p448_p13 = por %p447_p12, %p446_p11 }
  0x29   :  { %330 = vmatpush3.msra.mxu0 %v64_v5  ;;  %384 = vmatpush3.msra.mxu1 %v64_v5 }
  0x2a   :  { %331 = vmatprep.subr.mxu0 %v63_v6  ;;  %369 = vmatprep.subr.mxu1 %v63_v6  ;;  %p449_p0 = pnand %p448_p13, %p442_p10 }
  0x2b   :  { %332 = vmatpush3.msra.mxu0 %v63_v6  ;;  %385 = vmatpush3.msra.mxu1 %v63_v6 }
  0x2c   :  { %333 = vmatprep.subr.mxu0 %v62_v7  ;;  %370 = vmatprep.subr.mxu1 %v62_v7 }
  0x2d   :  { %334 = vmatpush3.msra.mxu0 %v62_v7  ;;  %386 = vmatpush3.msra.mxu1 %v62_v7 }
  0x2e   :  { %335 = vmatprep.subr.mxu0 %v61_v8  ;;  %371 = vmatprep.subr.mxu1 %v61_v8 }
  0x2f   :  { %336 = vmatpush3.msra.mxu0 %v61_v8  ;;  %387 = vmatpush3.msra.mxu1 %v61_v8 }
  0x30   :  { %337 = vmatprep.subr.mxu0 %v60_v9  ;;  %372 = vmatprep.subr.mxu1 %v60_v9 }
  0x31   :  { %338 = vmatpush3.msra.mxu0 %v60_v9  ;;  %388 = vmatpush3.msra.mxu1 %v60_v9 }
  0x32   :  { %339 = vmatprep.subr.mxu0 %v59_v10  ;;  %373 = vmatprep.subr.mxu1 %v59_v10 }
  0x33   :  { %340 = vmatpush3.msra.mxu0 %v59_v10  ;;  %389 = vmatpush3.msra.mxu1 %v59_v10 }
  0x34   :  { %341 = vmatprep.subr.mxu0 %v58_v11  ;;  %374 = vmatprep.subr.mxu1 %v58_v11 }
  0x35   :  { %342 = vmatpush3.msra.mxu0 %v58_v11  ;;  %390 = vmatpush3.msra.mxu1 %v58_v11 }
  0x36   :  { %343 = vmatprep.subr.mxu0 %v57_v12  ;;  %375 = vmatprep.subr.mxu1 %v57_v12 }
  0x37   :  { %344 = vmatpush3.msra.mxu0 %v57_v12  ;;  %391 = vmatpush3.msra.mxu1 %v57_v12 }
  0x38   :  { %345 = vmatprep.subr.mxu0 %v56_v13  ;;  %351 = vmatprep.mubr.f32.mxu0 %v46_v14 }
  0x39   :  { %346 = vmatpush3.msra.mxu0 %v56_v13  ;;  %376 = vmatprep.subr.mxu1 %v56_v13 }
  0x3a   :  { %347 = vmatprep.subr.mxu0 %v55_v15  ;;  %392 = vmatpush3.msra.mxu1 %v56_v13 }
  0x3b   :  { %348 = vmatpush3.msra.mxu0 %v55_v15  ;;  %377 = vmatprep.subr.mxu1 %v55_v15 }
  0x3c   :  { %349 = vmatprep.subr.mxu0 %v54_v16  ;;  %393 = vmatpush3.msra.mxu1 %v55_v15 }
  0x3d   :  { %350 = vmatpush3.msra.mxu0 %v54_v16  ;;  %378 = vmatprep.subr.mxu1 %v54_v16 }
  0x3e   :  { %352 = vmatmul.mubr.f32.vlgmr.msra.gmra.mxu0 %v47_v17  ;;  %394 = vmatpush3.msra.mxu1 %v54_v16 }
  0x3f   :  { %354 = vmatprep.mubr.f32.mxu0 %v48_v18  ;;  %357 = vmatprep.mubr.f32.mxu1 %v50_v19 }
  0x40   :  { %358 = vmatmul.mubr.f32.vlgmr.msra.gmra.mxu1 %v51_v20 }
  0x41   :  { %360 = vmatprep.mubr.f32.mxu1 %v52_v21 }
  0x42   :  { %355 = vmatmul.mubr.f32.gmra.mxu0 %v49_v22 }
  0x44   :  { %361 = vmatmul.mubr.f32.gmra.mxu1 %v53_v23 }
  0xfe   :  { %v353_v25 = vpop.f32.mrf.mxu0 }
  0xff   :  { %v149_v26 = vadd.f32 %v353_v25, %v294_v24 }
 0x100   :  { %v143_v27 = vpop.f32.mrf.mxu0  ;;  %v359_v28 = vpop.f32.mrf.mxu1 }
 0x101   :  { %183 = vst [vmem:[#allocation7 + $0x8] sm:$0xff] %v149_v26  ;;  %v144_v29 = vadd.f32 %v294_v24, %v143_v27  ;;  %v169_v30 = vadd.f32 %v359_v28, %v294_v24  ;;  %v239_v38 = vmul.f32 %v149_v26, %v149_v26 }
 0x102   :  { %v356_v31 = vpop.f32.mrf.mxu0  ;;  %v163_v32 = vpop.f32.mrf.mxu1 }
 0x103   :  { %182 = vst [vmem:[#allocation7] sm:$0xff] %v144_v29  ;;  %v238_v33 = vmul.f32 %v144_v29, %v144_v29  ;;  %v159_v34 = vadd.f32 %v356_v31, %v294_v24  ;;  %187 = vst [vmem:[#allocation7 + $0x28] sm:$0xff] %v169_v30  ;;  %v164_v36 = vadd.f32 %v294_v24, %v163_v32 }
 0x104   :  { %v153_v35 = vpop.f32.mrf.mxu0  ;;  %v362_v37 = vpop.f32.mrf.mxu1  ;;  %v225_v39 = vadd.f32 %v149_v26, %v144_v29 }
 0x105   :  { %185 = vst [vmem:[#allocation7 + $0x18] sm:$0xff] %v159_v34  ;;  %v154_v40 = vadd.f32 %v294_v24, %v153_v35  ;;  %v179_v41 = vadd.f32 %v362_v37, %v294_v24  ;;  %186 = vst [vmem:[#allocation7 + $0x20] sm:$0xff] %v164_v36  ;;  %v246_v43 = vadd.f32 %v239_v38, %v238_v33 }
 0x106   :  { %v173_v42 = vpop.f32.mrf.mxu1  ;;  %v241_v47 = vmul.f32 %v159_v34, %v159_v34 }
 0x107   :  { %184 = vst [vmem:[#allocation7 + $0x10] sm:$0xff] %v154_v40  ;;  %v226_v44 = vadd.f32 %v225_v39, %v154_v40  ;;  %v240_v45 = vmul.f32 %v154_v40, %v154_v40  ;;  %189 = vst [vmem:[#allocation7 + $0x38] sm:$0xff] %v179_v41  ;;  %v174_v46 = vadd.f32 %v294_v24, %v173_v42 }
 0x109   :  { %v247_v48 = vadd.f32 %v246_v43, %v240_v45  ;;  %v227_v49 = vadd.f32 %v226_v44, %v159_v34  ;;  %188 = vst [vmem:[#allocation7 + $0x30] sm:$0xff] %v174_v46 }
 0x10a   :  { %452 = shalt.err (!%p449_p0)
}
 0x10b   :  { %273 = dma.vmem_to_hbm [thread:$0]  %s268_s28, 1024, %s547_s3, [#allocation4], %s490_s18, %s490_s18, %s491_s19   ;;  %v228_v50 = vadd.f32 %v227_v49, %v164_v36  ;;  %v242_v51 = vmul.f32 %v164_v36, %v164_v36  ;;  %v248_v52 = vadd.f32 %v247_v48, %v241_v47  ;;  %v243_v53 = vmul.f32 %v169_v30, %v169_v30 }
 0x10c   :  { %v244_v57 = vmul.f32 %v174_v46, %v174_v46  ;;  %v245_v59 = vmul.f32 %v179_v41, %v179_v41  ;;  %s494_s3 = smov [#allocation8]   ;;  %vm259_vm0 = vcmask 1040384  }
 0x10d   :  { %v249_v54 = vadd.f32 %v248_v52, %v242_v51  ;;  %v229_v55 = vadd.f32 %v228_v50, %v169_v30  ;;  %s280_s5 = sshll.u32 %s494_s3, 4  ;;  %s281_s5 = int_to_ptr.vmem [resolvable:$true] %s280_s5 }
 0x10e   :  { %s461_s6 = scalar_lea.vmem %s281_s5, 32  ;;  %p466_p2 = scmp.lt.s32.totalorder %s281_s5, %s281_s5 }
 0x10f   :  { %v230_v56 = vadd.f32 %v229_v55, %v174_v46  ;;  %v250_v58 = vadd.f32 %v249_v54, %v243_v53  ;;  %p462_p1 = scmp.ne.s32.totalorder %s281_s5, %s461_s6  ;;  %p467_p3 = scmp.lt.s32.totalorder %s461_s6, %s461_s6 }
 0x111   :  { %v231_v60 = vadd.f32 %v230_v56, %v179_v41  ;;  %v251_v61 = vadd.f32 %v250_v58, %v244_v57  ;;  %p468_p4 = por %p467_p3, %p466_p2 }
 0x113   :  { %v232_v62 = vrot.slane %v231_v60, 4  ;;  %v252_v63 = vadd.f32 %v251_v61, %v245_v59  ;;  %p469_p5 = pnand %p468_p4, %p462_p1 }
 0x115   :  { %v233_v0 = vadd.f32 %v232_v62, %v231_v60  ;;  %v253_v1 = vrot.slane %v252_v63, 4 }
 0x117   :  { %v234_v2 = vrot.slane %v233_v0, 2  ;;  %v254_v3 = vadd.f32 %v253_v1, %v252_v63 }
 0x119   :  { %v235_v4 = vadd.f32 %v234_v2, %v233_v0  ;;  %v255_v5 = vrot.slane %v254_v3, 2 }
 0x11b   :  { %v236_v6 = vrot.slane %v235_v4, 1  ;;  %v256_v7 = vadd.f32 %v255_v5, %v254_v3 }
 0x11d   :  { %v257_v8 = vrot.slane %v256_v7, 1  ;;  %v237_v9 = vadd.f32 %v236_v6, %v235_v4 }
 0x11f   :  { %v258_v10 = vadd.f32 %v257_v8, %v256_v7 }
 0x121   :  { %v260_v11 = vsel %vm259_vm0, %v237_v9, %v258_v10 }
 0x122   :  { %261 = vst [vmem:[#allocation8] sm:$0x3] %v260_v11 }
 0x123   :  { %472 = shalt.err (!%p469_p5)
}
 0x124   :  { %283 = dma.vmem_to_hbm [thread:$0]  %s281_s5, 32, %s548_s4, [#allocation9]  }
 0x125   :  { %485 = dma.done.wait [#allocation4], 1024  }
 0x126   :  { %486 = vsyncadd [#allocation4], 4294966272 }
 0x127   :  { %487 = dma.done.wait [#allocation9], 32  }
 0x128   :  { %488 = vsyncadd [#allocation9], 4294967264 }
 0x129   :  { %290 = vsyncpa [#allocation3], 1 }
 0x12a   :  { %291 = vsyncpa [#allocation6], 1 }
 0x12b   :  { %292 = vsyncpa [#allocation4], 1 }
 0x12c   :  { %293 = vsyncpa [#allocation9], 1 }

</bundles_post_ra>
